<compile_context>
chip_gen: v7x
topology: tpu7x:2x2x1
jax: 0.10.0
libtpu: 0.0.40
codegen_flags: <defaults>
</compile_context>

<pallas_src>
import jax
import jax.numpy as jnp
from jax import lax
from jax.experimental import pallas as pl
from jax.experimental.pallas import tpu as pltpu


# ----------------------------------------------------------------------------
# Architecture constants
# ----------------------------------------------------------------------------

N_CLASSES = 7
DILATION = (1, 1, 1)                 # (opt.dilation, 1, 1) with opt.dilation = 1
IMG_SHAPE = (1, 13, 5, 5)            # (Cin, D, H, W)
IN_FLAT = 1 * 13 * 5 * 5             # 325
CONV_FLAT = 270                      # nn.Flatten() width of the conv stack
LRELU_SLOPE = 0.01                   # F.leaky_relu default

CONV_CFG = [
    # (Cout, Cin, kernel,   stride,    padding)
    (20,  1, (3, 3, 3), (1, 1, 1), (1, 1, 1)),
    (20, 20, (3, 1, 1), (2, 1, 1), (1, 0, 0)),
    (35, 20, (3, 3, 3), (1, 1, 1), (1, 0, 0)),
    (35, 35, (3, 1, 1), (2, 1, 1), (1, 0, 0)),
    (20, 35, (3, 1, 1), (1, 1, 1), (1, 0, 0)),
    (10, 20, (2, 1, 1), (2, 1, 1), (1, 0, 0)),
]
LINEAR_DIMS = [(277, 128), (128, 64), (64, 16), (16, 1)]


def _ceil_to(x, m):
    return (x + m - 1) // m * m


# Padded, TPU-tile-friendly dims: lanes -> multiples of 128, sublanes -> 8.
KP = _ceil_to(IN_FLAT, 128)          # 384  (flattened image, padded)
NCP = _ceil_to(N_CLASSES, 8)         # 8    (classes, padded)
HP = 128                             # all MLP widths padded to 128 lanes


# ----------------------------------------------------------------------------
# Fused Pallas kernel: folded conv+l1, embedding lookup, l2/l3/l4 head
# ----------------------------------------------------------------------------

def _discriminator_kernel(tgt_ref, x_ref,
                          wimg_ref, embw1_ref, b1_ref,
                          w2_ref, b2_ref, w3_ref, b3_ref, w4_ref, b4_ref,
                          o_ref):
    """Entire Discriminator forward on padded (8,128)-tile operands."""

    def mm(a, b):
        return jnp.dot(a, b, preferred_element_type=jnp.float32)

    def lrelu(v):
        return jnp.where(v > 0, v, LRELU_SLOPE * v)

    # label_embedding(target) @ w1_emb as a one-hot matmul against the
    # pre-multiplied table (no gather needed).
    tgt = tgt_ref[...]                                              # (BM, 1) i32
    cls = lax.broadcasted_iota(jnp.int32,
                               (tgt.shape[0], embw1_ref.shape[0]), 1)
    onehot = (cls == tgt).astype(jnp.float32)                       # (BM, NCP)

    # Conv3d stack + Flatten + concat + l1 == one affine map (folded outside).
    h = lrelu(mm(x_ref[...], wimg_ref[...])
              + mm(onehot, embw1_ref[...])
              + b1_ref[...])                                        # (BM, 128)
    # TODO(synk): nn.Dropout(p=0.5) between l1 and l2 is identity (eval mode);
    #             train-mode stochastic masking is not implemented.
    h = lrelu(mm(h, w2_ref[...]) + b2_ref[...])
    h = lrelu(mm(h, w3_ref[...]) + b3_ref[...])
    h = lrelu(mm(h, w4_ref[...]) + b4_ref[...])

    o_ref[...] = h                                                  # (BM, 128)


# ----------------------------------------------------------------------------
# Parameter construction (synthetic, deterministic) and one-time folding
# ----------------------------------------------------------------------------

def init_params(seed=42, scale=0.1):
    key = jax.random.PRNGKey(seed)
    params = {"conv": [], "linear": []}

    for (cout, cin, k, _, _) in CONV_CFG:
        key, kw, kb = jax.random.split(key, 3)
        w = scale * jax.random.normal(kw, (cout, cin) + k, dtype=jnp.float32)
        b = scale * jax.random.normal(kb, (cout,), dtype=jnp.float32)
        params["conv"].append((w, b))

    for (din, dout) in LINEAR_DIMS:
        key, kw, kb = jax.random.split(key, 3)
        w = scale * jax.random.normal(kw, (din, dout), dtype=jnp.float32)
        b = scale * jax.random.normal(kb, (dout,), dtype=jnp.float32)
        params["linear"].append((w, b))

    key, ke = jax.random.split(key)
    params["embedding"] = scale * jax.random.normal(
        ke, (N_CLASSES, N_CLASSES), dtype=jnp.float32)
    return params


def _conv_stack(conv_params, x):
    """PyTorch-equivalent Conv3d stack (NCDHW) via lax, used for the one-time
    fold and for the correctness reference."""
    for (w, b), (_, _, _, stride, pad) in zip(conv_params, CONV_CFG):
        x = lax.conv_general_dilated(
            x, w,
            window_strides=stride,
            padding=[(p, p) for p in pad],
            rhs_dilation=DILATION,
            dimension_numbers=("NCDHW", "OIDHW", "NCDHW"),
            precision=lax.Precision.HIGHEST)
        x = x + b.reshape(1, -1, 1, 1, 1)
    return x.reshape(x.shape[0], -1)             # (N, 270)  == nn.Flatten()


def _pad2(a, rows, cols):
    return jnp.pad(a, ((0, rows - a.shape[0]), (0, cols - a.shape[1])))


def fold_params(params):
    """One-time prep: fold conv stack -> affine, then fold it (and the conv
    bias / embedding table) directly into l1; zero-pad everything to full
    (8, 128) tiles."""
    hp = lambda a, b: jnp.dot(a, b, precision=lax.Precision.HIGHEST)

    # Fold the purely-linear conv stack into (wc, bc) via a basis batch.
    basis = jnp.concatenate(
        [jnp.zeros((1, IN_FLAT), jnp.float32),
         jnp.eye(IN_FLAT, dtype=jnp.float32)], axis=0
    ).reshape((IN_FLAT + 1,) + IMG_SHAPE)                   # (326, 1, 13, 5, 5)
    feat = _conv_stack(params["conv"], basis)               # (326, 270)
    assert feat.shape == (IN_FLAT + 1, CONV_FLAT), feat.shape
    bc = feat[0]                                            # (270,)
    wc = feat[1:] - bc[None, :]                             # (325, 270)

    (w1, b1), (w2, b2), (w3, b3), (w4, b4) = params["linear"]
    w1_feat, w1_emb = w1[:CONV_FLAT], w1[CONV_FLAT:]        # (270,128), (7,128)

    # Fold conv stack + flatten + concat straight into l1 (no nonlinearity
    # anywhere between them in the original module).
    w_img = hp(wc, w1_feat)                                 # (325, 128)
    b1_full = hp(bc[None, :], w1_feat)[0] + b1              # (128,)
    emb_w1 = hp(params["embedding"], w1_emb)                # (7, 128)

    return {
        "w_img": _pad2(w_img, KP, HP),
        "emb_w1": _pad2(emb_w1, NCP, HP),
        "b1": _pad2(b1_full[None, :], 1, HP),
        "w2": _pad2(w2, HP, HP),
        "b2": _pad2(b2[None, :], 1, HP),
        "w3": _pad2(w3, HP, HP),
        "b3": _pad2(b3[None, :], 1, HP),
        "w4": _pad2(w4, HP, HP),
        "b4": _pad2(b4[None, :], 1, HP),
    }


# ----------------------------------------------------------------------------
# Forward pass (single fused pallas_call) and XLA references
# ----------------------------------------------------------------------------

def _row_block(B):
    return 8 if B <= 64 else 128


def _pad_inputs(imgs, target):
    B = imgs.shape[0]
    BM = _row_block(B)
    BP = _ceil_to(max(B, 1), BM)
    x = jnp.pad(imgs.reshape(B, -1).astype(jnp.float32),
                ((0, BP - B), (0, KP - IN_FLAT)))            # (BP, KP)
    t = jnp.pad(target.astype(jnp.int32), (0, BP - B)).reshape(BP, 1)
    return x, t, BM


@jax.jit
def discriminator_forward(folded, imgs, target):
    """imgs: (B, 1, 13, 5, 5) f32, target: (B,) int32 -> (B, 1) f32."""
    assert imgs.shape[1:] == IMG_SHAPE, imgs.shape
    B = imgs.shape[0]
    x, t, BM = _pad_inputs(imgs, target)
    BP = x.shape[0]

    row = lambda i: (i, 0)      # batch-tiled operands
    rep = lambda i: (0, 0)      # weights resident across the grid

    out = pl.pallas_call(
        _discriminator_kernel,
        out_shape=jax.ShapeDtypeStruct((BP, HP), jnp.float32),
        grid=(BP // BM,),
        in_specs=[
            pl.BlockSpec((BM, 1), row),       # target
            pl.BlockSpec((BM, KP), row),      # flattened image
            pl.BlockSpec((KP, HP), rep),      # folded conv+l1 weight
            pl.BlockSpec((NCP, HP), rep),     # embedding @ w1_emb
            pl.BlockSpec((1, HP), rep),       # folded l1 bias
            pl.BlockSpec((HP, HP), rep),      # w2
            pl.BlockSpec((1, HP), rep),       # b2
            pl.BlockSpec((HP, HP), rep),      # w3
            pl.BlockSpec((1, HP), rep),       # b3
            pl.BlockSpec((HP, HP), rep),      # w4
            pl.BlockSpec((1, HP), rep),       # b4
        ],
        out_specs=pl.BlockSpec((BM, HP), row),
        compiler_params=pltpu.CompilerParams(
            dimension_semantics=("parallel",)),
    )(t, x,
      folded["w_img"], folded["emb_w1"], folded["b1"],
      folded["w2"], folded["b2"],
      folded["w3"], folded["b3"],
      folded["w4"], folded["b4"])

    return out[:B, :1]


def reference_forward(params, imgs, target):
    """Per-layer XLA reference: lax.conv_general_dilated stack + jnp MLP."""
    x = _conv_stack(params["conv"], imgs.astype(jnp.float32))     # (B, 270)
    emb = params["embedding"][target]                             # (B, 7)
    x = jnp.concatenate([x, emb], axis=-1)                        # (B, 277)
    for (w, b) in params["linear"]:
        y = jnp.dot(x, w, precision=lax.Precision.HIGHEST) + b
        x = jnp.where(y > 0, y, LRELU_SLOPE * y)
    return x                                                      # (B, 1)


def folded_reference(folded, imgs, target):
    """Pure-XLA mirror of exactly what the Pallas kernel computes."""
    B = imgs.shape[0]
    x, t, _ = _pad_inputs(imgs, target)

    hp = lambda a, b: jnp.dot(a, b, precision=lax.Precision.HIGHEST)
    lrelu = lambda v: jnp.where(v > 0, v, LRELU_SLOPE * v)

    onehot = (jnp.arange(NCP, dtype=jnp.int32)[None, :] == t).astype(jnp.float32)
    h = lrelu(hp(x, folded["w_img"]) + hp(onehot, folded["emb_w1"]) + folded["b1"])
    h = lrelu(hp(h, folded["w2"]) + folded["b2"])
    h = lrelu(hp(h, folded["w3"]) + folded["b3"])
    h = lrelu(hp(h, folded["w4"]) + folded["b4"])
    return h[:B, :1]


# ----------------------------------------------------------------------------
# Main
# ----------------------------------------------------------------------------

if __name__ == "__main__":
    params = init_params(seed=42)
    folded = fold_params(params)

    key = jax.random.PRNGKey(0)
    k_img, k_lbl = jax.random.split(key)
    B, D, H, W = 2, 13, 5, 5
    imgs = jax.random.normal(k_img, (B, 1, D, H, W), dtype=jnp.float32)
    target = jax.random.randint(k_lbl, (B,), 0, N_CLASSES, dtype=jnp.int32)

    out = jax.block_until_ready(discriminator_forward(folded, imgs, target))
    assert out.shape == (B, 1), out.shape
    assert out.dtype == jnp.float32, out.dtype

    # Correctness check 1 (pure XLA, no Pallas): the folded/padded/split math
    # matches the per-layer Conv3d + concat + MLP forward exactly.
    ref_layered = reference_forward(params, imgs, target)
    ref_folded = folded_reference(folded, imgs, target)
    ref_mag = float(jnp.max(jnp.abs(ref_layered))) + 1e-6
    fold_err = float(jnp.max(jnp.abs(ref_folded - ref_layered)))
    assert fold_err < 1e-4 + 1e-3 * ref_mag, \
        f"fold mismatch vs per-layer reference: {fold_err} (mag {ref_mag})"

    # Correctness check 2: the Pallas kernel matches its XLA mirror (loose
    # tolerance only to accommodate MXU matmul precision differences).
    kern_err = float(jnp.max(jnp.abs(out - ref_folded)))
    assert kern_err < 1e-3 + 2e-2 * ref_mag, \
        f"Pallas kernel mismatch: {kern_err} (mag {ref_mag})"

    print("KERNEL_OK")
</pallas_src>

<mosaic_0001>
module attributes {stable_mosaic.version = 11 : i64} {
  func.func @_discriminator_kernel(%arg0: i32, %arg1: memref<8x1xi32, #tpu.memory_space<vmem>>, %arg2: memref<8x384xf32, #tpu.memory_space<vmem>>, %arg3: memref<384x128xf32, #tpu.memory_space<vmem>>, %arg4: memref<8x128xf32, #tpu.memory_space<vmem>>, %arg5: memref<1x128xf32, #tpu.memory_space<vmem>>, %arg6: memref<128x128xf32, #tpu.memory_space<vmem>>, %arg7: memref<1x128xf32, #tpu.memory_space<vmem>>, %arg8: memref<128x128xf32, #tpu.memory_space<vmem>>, %arg9: memref<1x128xf32, #tpu.memory_space<vmem>>, %arg10: memref<128x128xf32, #tpu.memory_space<vmem>>, %arg11: memref<1x128xf32, #tpu.memory_space<vmem>>, %arg12: memref<8x128xf32, #tpu.memory_space<vmem>>) attributes {dimension_semantics = [#tpu.dimension_semantics<parallel>], iteration_bounds = array<i64: 1>, scalar_prefetch = 0 : i64, scratch_operands = 0 : i64, tpu.core_type = #tpu.core_type<tc>, window_params = [{transform_indices = @transform_0, window_bounds = array<i64: 8, 1>}, {transform_indices = @transform_1, window_bounds = array<i64: 8, 384>}, {pipeline_mode = #tpu.pipeline_mode<synchronous>, transform_indices = @transform_2, window_bounds = array<i64: 384, 128>}, {pipeline_mode = #tpu.pipeline_mode<synchronous>, transform_indices = @transform_3, window_bounds = array<i64: 8, 128>}, {pipeline_mode = #tpu.pipeline_mode<synchronous>, transform_indices = @transform_4, window_bounds = array<i64: 1, 128>}, {pipeline_mode = #tpu.pipeline_mode<synchronous>, transform_indices = @transform_5, window_bounds = array<i64: 128, 128>}, {pipeline_mode = #tpu.pipeline_mode<synchronous>, transform_indices = @transform_6, window_bounds = array<i64: 1, 128>}, {pipeline_mode = #tpu.pipeline_mode<synchronous>, transform_indices = @transform_7, window_bounds = array<i64: 128, 128>}, {pipeline_mode = #tpu.pipeline_mode<synchronous>, transform_indices = @transform_8, window_bounds = array<i64: 1, 128>}, {pipeline_mode = #tpu.pipeline_mode<synchronous>, transform_indices = @transform_9, window_bounds = array<i64: 128, 128>}, {pipeline_mode = #tpu.pipeline_mode<synchronous>, transform_indices = @transform_10, window_bounds = array<i64: 1, 128>}, {transform_indices = @transform_11, window_bounds = array<i64: 8, 128>}]} {
    %c0 = arith.constant 0 : index
    %c0_0 = arith.constant 0 : index
    %0 = vector.load %arg1[%c0, %c0_0] : memref<8x1xi32, #tpu.memory_space<vmem>>, vector<8x1xi32>
    %1 = tpu.iota {dimensions = array<i32: 1>} : vector<8x8xi32>
    %2 = vector.broadcast %0 : vector<8x1xi32> to vector<8x8xi32>
    %3 = arith.cmpi eq, %1, %2 : vector<8x8xi32>
    %4 = arith.extui %3 : vector<8x8xi1> to vector<8x8xi32>
    %5 = arith.sitofp %4 : vector<8x8xi32> to vector<8x8xf32>
    %c0_1 = arith.constant 0 : index
    %c0_2 = arith.constant 0 : index
    %6 = vector.load %arg2[%c0_1, %c0_2] : memref<8x384xf32, #tpu.memory_space<vmem>>, vector<8x384xf32>
    %c0_3 = arith.constant 0 : index
    %c0_4 = arith.constant 0 : index
    %7 = vector.load %arg3[%c0_3, %c0_4] : memref<384x128xf32, #tpu.memory_space<vmem>>, vector<384x128xf32>
    %cst = arith.constant dense<0.000000e+00> : vector<8x128xf32>
    %8 = tpu.matmul %6, %7, %cst {dimension_numbers = #tpu.dot_dimension_numbers<[1], [0], [0], [1], [0, 0, 1, 1], [], []>} : vector<8x384xf32>, vector<384x128xf32>, vector<8x128xf32> -> vector<8x128xf32>
    %c0_5 = arith.constant 0 : index
    %c0_6 = arith.constant 0 : index
    %9 = vector.load %arg4[%c0_5, %c0_6] : memref<8x128xf32, #tpu.memory_space<vmem>>, vector<8x128xf32>
    %cst_7 = arith.constant dense<0.000000e+00> : vector<8x128xf32>
    %10 = tpu.matmul %5, %9, %cst_7 {dimension_numbers = #tpu.dot_dimension_numbers<[1], [0], [0], [1], [0, 0, 1, 1], [], []>} : vector<8x8xf32>, vector<8x128xf32>, vector<8x128xf32> -> vector<8x128xf32>
    %11 = arith.addf %8, %10 : vector<8x128xf32>
    %c0_8 = arith.constant 0 : index
    %c0_9 = arith.constant 0 : index
    %12 = vector.load %arg5[%c0_8, %c0_9] : memref<1x128xf32, #tpu.memory_space<vmem>>, vector<1x128xf32>
    %13 = vector.broadcast %12 : vector<1x128xf32> to vector<8x128xf32>
    %14 = arith.addf %11, %13 : vector<8x128xf32>
    %cst_10 = arith.constant 0.000000e+00 : f32
    %15 = vector.broadcast %cst_10 : f32 to vector<8x128xf32>
    %16 = arith.cmpf ogt, %14, %15 : vector<8x128xf32>
    %cst_11 = arith.constant 0.00999999977 : f32
    %17 = vector.broadcast %cst_11 : f32 to vector<8x128xf32>
    %18 = arith.mulf %17, %14 : vector<8x128xf32>
    %19 = arith.select %16, %14, %18 : vector<8x128xi1>, vector<8x128xf32>
    %c0_12 = arith.constant 0 : index
    %c0_13 = arith.constant 0 : index
    %20 = vector.load %arg6[%c0_12, %c0_13] : memref<128x128xf32, #tpu.memory_space<vmem>>, vector<128x128xf32>
    %cst_14 = arith.constant dense<0.000000e+00> : vector<8x128xf32>
    %21 = tpu.matmul %19, %20, %cst_14 {dimension_numbers = #tpu.dot_dimension_numbers<[1], [0], [0], [1], [0, 0, 1, 1], [], []>} : vector<8x128xf32>, vector<128x128xf32>, vector<8x128xf32> -> vector<8x128xf32>
    %c0_15 = arith.constant 0 : index
    %c0_16 = arith.constant 0 : index
    %22 = vector.load %arg7[%c0_15, %c0_16] : memref<1x128xf32, #tpu.memory_space<vmem>>, vector<1x128xf32>
    %23 = vector.broadcast %22 : vector<1x128xf32> to vector<8x128xf32>
    %24 = arith.addf %21, %23 : vector<8x128xf32>
    %cst_17 = arith.constant 0.000000e+00 : f32
    %25 = vector.broadcast %cst_17 : f32 to vector<8x128xf32>
    %26 = arith.cmpf ogt, %24, %25 : vector<8x128xf32>
    %cst_18 = arith.constant 0.00999999977 : f32
    %27 = vector.broadcast %cst_18 : f32 to vector<8x128xf32>
    %28 = arith.mulf %27, %24 : vector<8x128xf32>
    %29 = arith.select %26, %24, %28 : vector<8x128xi1>, vector<8x128xf32>
    %c0_19 = arith.constant 0 : index
    %c0_20 = arith.constant 0 : index
    %30 = vector.load %arg8[%c0_19, %c0_20] : memref<128x128xf32, #tpu.memory_space<vmem>>, vector<128x128xf32>
    %cst_21 = arith.constant dense<0.000000e+00> : vector<8x128xf32>
    %31 = tpu.matmul %29, %30, %cst_21 {dimension_numbers = #tpu.dot_dimension_numbers<[1], [0], [0], [1], [0, 0, 1, 1], [], []>} : vector<8x128xf32>, vector<128x128xf32>, vector<8x128xf32> -> vector<8x128xf32>
    %c0_22 = arith.constant 0 : index
    %c0_23 = arith.constant 0 : index
    %32 = vector.load %arg9[%c0_22, %c0_23] : memref<1x128xf32, #tpu.memory_space<vmem>>, vector<1x128xf32>
    %33 = vector.broadcast %32 : vector<1x128xf32> to vector<8x128xf32>
    %34 = arith.addf %31, %33 : vector<8x128xf32>
    %cst_24 = arith.constant 0.000000e+00 : f32
    %35 = vector.broadcast %cst_24 : f32 to vector<8x128xf32>
    %36 = arith.cmpf ogt, %34, %35 : vector<8x128xf32>
    %cst_25 = arith.constant 0.00999999977 : f32
    %37 = vector.broadcast %cst_25 : f32 to vector<8x128xf32>
    %38 = arith.mulf %37, %34 : vector<8x128xf32>
    %39 = arith.select %36, %34, %38 : vector<8x128xi1>, vector<8x128xf32>
    %c0_26 = arith.constant 0 : index
    %c0_27 = arith.constant 0 : index
    %40 = vector.load %arg10[%c0_26, %c0_27] : memref<128x128xf32, #tpu.memory_space<vmem>>, vector<128x128xf32>
    %cst_28 = arith.constant dense<0.000000e+00> : vector<8x128xf32>
    %41 = tpu.matmul %39, %40, %cst_28 {dimension_numbers = #tpu.dot_dimension_numbers<[1], [0], [0], [1], [0, 0, 1, 1], [], []>} : vector<8x128xf32>, vector<128x128xf32>, vector<8x128xf32> -> vector<8x128xf32>
    %c0_29 = arith.constant 0 : index
    %c0_30 = arith.constant 0 : index
    %42 = vector.load %arg11[%c0_29, %c0_30] : memref<1x128xf32, #tpu.memory_space<vmem>>, vector<1x128xf32>
    %43 = vector.broadcast %42 : vector<1x128xf32> to vector<8x128xf32>
    %44 = arith.addf %41, %43 : vector<8x128xf32>
    %cst_31 = arith.constant 0.000000e+00 : f32
    %45 = vector.broadcast %cst_31 : f32 to vector<8x128xf32>
    %46 = arith.cmpf ogt, %44, %45 : vector<8x128xf32>
    %cst_32 = arith.constant 0.00999999977 : f32
    %47 = vector.broadcast %cst_32 : f32 to vector<8x128xf32>
    %48 = arith.mulf %47, %44 : vector<8x128xf32>
    %49 = arith.select %46, %44, %48 : vector<8x128xi1>, vector<8x128xf32>
    %c0_33 = arith.constant 0 : index
    %c0_34 = arith.constant 0 : index
    %50 = vector.load %arg12[%c0_33, %c0_34] : memref<8x128xf32, #tpu.memory_space<vmem>>, vector<8x128xf32>
    tpu.vector_store %arg12[%c0_33, %c0_34], %49 {strides = array<i32>} : memref<8x128xf32, #tpu.memory_space<vmem>>, vector<8x128xf32>,
    return
  }
  func.func @transform_0(%arg0: i32) -> (i32, i32) {
    %c0_i32 = arith.constant 0 : i32
    %c0_i32_0 = arith.constant 0 : i32
    return %arg0, %c0_i32 : i32, i32
  }
  func.func @transform_1(%arg0: i32) -> (i32, i32) {
    %c0_i32 = arith.constant 0 : i32
    %c0_i32_0 = arith.constant 0 : i32
    return %arg0, %c0_i32 : i32, i32
  }
  func.func @transform_2(%arg0: i32) -> (i32, i32) {
    %c0_i32 = arith.constant 0 : i32
    %c0_i32_0 = arith.constant 0 : i32
    %c0_i32_1 = arith.constant 0 : i32
    return %c0_i32, %c0_i32_0 : i32, i32
  }
  func.func @transform_3(%arg0: i32) -> (i32, i32) {
    %c0_i32 = arith.constant 0 : i32
    %c0_i32_0 = arith.constant 0 : i32
    %c0_i32_1 = arith.constant 0 : i32
    return %c0_i32, %c0_i32_0 : i32, i32
  }
  func.func @transform_4(%arg0: i32) -> (i32, i32) {
    %c0_i32 = arith.constant 0 : i32
    %c0_i32_0 = arith.constant 0 : i32
    %c0_i32_1 = arith.constant 0 : i32
    return %c0_i32, %c0_i32_0 : i32, i32
  }
  func.func @transform_5(%arg0: i32) -> (i32, i32) {
    %c0_i32 = arith.constant 0 : i32
    %c0_i32_0 = arith.constant 0 : i32
    %c0_i32_1 = arith.constant 0 : i32
    return %c0_i32, %c0_i32_0 : i32, i32
  }
  func.func @transform_6(%arg0: i32) -> (i32, i32) {
    %c0_i32 = arith.constant 0 : i32
    %c0_i32_0 = arith.constant 0 : i32
    %c0_i32_1 = arith.constant 0 : i32
    return %c0_i32, %c0_i32_0 : i32, i32
  }
  func.func @transform_7(%arg0: i32) -> (i32, i32) {
    %c0_i32 = arith.constant 0 : i32
    %c0_i32_0 = arith.constant 0 : i32
    %c0_i32_1 = arith.constant 0 : i32
    return %c0_i32, %c0_i32_0 : i32, i32
  }
  func.func @transform_8(%arg0: i32) -> (i32, i32) {
    %c0_i32 = arith.constant 0 : i32
    %c0_i32_0 = arith.constant 0 : i32
    %c0_i32_1 = arith.constant 0 : i32
    return %c0_i32, %c0_i32_0 : i32, i32
  }
  func.func @transform_9(%arg0: i32) -> (i32, i32) {
    %c0_i32 = arith.constant 0 : i32
    %c0_i32_0 = arith.constant 0 : i32
    %c0_i32_1 = arith.constant 0 : i32
    return %c0_i32, %c0_i32_0 : i32, i32
  }
  func.func @transform_10(%arg0: i32) -> (i32, i32) {
    %c0_i32 = arith.constant 0 : i32
    %c0_i32_0 = arith.constant 0 : i32
    %c0_i32_1 = arith.constant 0 : i32
    return %c0_i32, %c0_i32_0 : i32, i32
  }
  func.func @transform_11(%arg0: i32) -> (i32, i32) {
    %c0_i32 = arith.constant 0 : i32
    %c0_i32_0 = arith.constant 0 : i32
    return %arg0, %c0_i32 : i32, i32
  }
}

</mosaic_0001>

<bundles_post_ra>
// kernel: discriminator_forward.1
= control target key start
LH: loop header
LB: loop body
LE: loop exit
PB: predicated region body
PF: predicated region fallthrough
CT: control target
= control target key end

     0   :  { %16 = vsyncpa [#allocation3], 0  ;;  %s1446_s0 = inlined_call_operand.vmem [shape: s32[8,1], index: 0, kind: input, shape index: {}]   ;;  %s1447_s1 = inlined_call_operand.vmem [shape: f32[8,384], index: 1, kind: input, shape index: {}]   ;;  %s1448_s2 = inlined_call_operand.vmem [shape: f32[384,128], index: 2, kind: input, shape index: {}]   ;;  %s1449_s3 = inlined_call_operand.vmem [shape: f32[8,128], index: 3, kind: input, shape index: {}]   ;;  %s1450_s4 = inlined_call_operand.vmem [shape: f32[1,128], index: 4, kind: input, shape index: {}]   ;;  %s1451_s5 = inlined_call_operand.vmem [shape: f32[128,128], index: 5, kind: input, shape index: {}]   ;;  %s1452_s6 = inlined_call_operand.vmem [shape: f32[1,128], index: 6, kind: input, shape index: {}]   ;;  %s1453_s7 = inlined_call_operand.hbm [shape: f32[128,128], index: 7, kind: input, shape index: {}]   ;;  %s1454_s8 = inlined_call_operand.vmem [shape: f32[1,128], index: 8, kind: input, shape index: {}]   ;;  %s1455_s9 = inlined_call_operand.hbm [shape: f32[128,128], index: 9, kind: input, shape index: {}]   ;;  %s1456_s10 = inlined_call_operand.vmem [shape: f32[1,128], index: 10, kind: input, shape index: {}]   ;;  %s1457_s11 = inlined_call_operand.vmem [shape: f32[8,128], index: 11, kind: output, shape index: {}]  }
   0x1   :  { %17 = vsyncpa [#allocation5], 0  ;;  %s1088_s17 = smov [#allocation2]   ;;  %s1040_s21 = scalar_lea.hbm %s1453_s7, 2048 }
   0x2   :  { %s37_s18 = sshll.u32 %s1088_s17, 4  ;;  %p1041_p0 = scmp.ne.s32.totalorder %s1453_s7, %s1040_s21  ;;  %s38_s18 = int_to_ptr.vmem [resolvable:$true] %s37_s18 }
   0x3   :  { %p1044_p1 = scmp.lt.u32.totalorder %s1040_s21, %s1453_s7 }
   0x5   :  { %p1046_p2 = pnand %p1044_p1, %p1041_p0 }
   0x7   :  { %1049 = shalt.err (!%p1046_p2)
}
   0x8   :  { %s1050_s26 = scalar_lea.vmem %s38_s18, 2048  ;;  %p1055_p4 = scmp.lt.s32.totalorder %s38_s18, %s38_s18 }
   0x9   :  { %p1051_p3 = scmp.ne.s32.totalorder %s38_s18, %s1050_s26  ;;  %p1056_p5 = scmp.lt.s32.totalorder %s1050_s26, %s1050_s26 }
   0xb   :  { %p1057_p6 = por %p1056_p5, %p1055_p4 }
   0xd   :  { %p1058_p7 = pnand %p1057_p6, %p1051_p3 }
   0xf   :  { %1061 = shalt.err (!%p1058_p7)
}
  0x10   :  { %s1089_s27 = smov 128   ;;  %s1090_s28 = smov 8  }
  0x11   :  { %43 = dma.hbm_to_vmem [thread:$0]  %s1453_s7, 2048, %s38_s18, [#allocation3], %s1089_s27, %s1089_s27, %s1090_s28  }
  0x12   :  { %s1091_s12 = smov [#allocation4]   ;;  %s1062_s16 = scalar_lea.hbm %s1455_s9, 2048 }
  0x13   :  { %s51_s13 = sshll.u32 %s1091_s12, 4  ;;  %p1063_p8 = scmp.ne.s32.totalorder %s1455_s9, %s1062_s16  ;;  %s52_s13 = int_to_ptr.vmem [resolvable:$true] %s51_s13 }
  0x14   :  { %p1066_p9 = scmp.lt.u32.totalorder %s1062_s16, %s1455_s9 }
  0x16   :  { %p1068_p10 = pnand %p1066_p9, %p1063_p8 }
  0x18   :  { %1071 = shalt.err (!%p1068_p10)
}
  0x19   :  { %s1072_s22 = scalar_lea.vmem %s52_s13, 2048  ;;  %p1077_p12 = scmp.lt.s32.totalorder %s52_s13, %s52_s13 }
  0x1a   :  { %p1073_p11 = scmp.ne.s32.totalorder %s52_s13, %s1072_s22  ;;  %p1078_p13 = scmp.lt.s32.totalorder %s1072_s22, %s1072_s22 }
  0x1c   :  { %p1079_p0 = por %p1078_p13, %p1077_p12 }
  0x1e   :  { %p1080_p1 = pnand %p1079_p0, %p1073_p11 }
  0x20   :  { %1083 = shalt.err (!%p1080_p1)
}
  0x21   :  { %57 = dma.hbm_to_vmem [thread:$0]  %s1455_s9, 2048, %s52_s13, [#allocation5], %s1089_s27, %s1089_s27, %s1090_s28  }
  0x22   :  { %1084 = dma.done.wait [#allocation3], 2048  }
  0x23   :  { %1085 = vsyncadd [#allocation3], 4294965248 }
  0x24   :  { %1086 = dma.done.wait [#allocation5], 2048  }
  0x25   :  { %1087 = vsyncadd [#allocation5], 4294965248  ;;  %v1092_v0 = vmov 0   ;;  %v1093_v1 = vmov 0.0   ;;  %v66_v2 = vld [vmem:[%s1446_s0] sm:$0xff]  ;;  %v95_v4 = vld [vmem:[%s1448_s2 + $0x88] sm:$0xff]  ;;  %v67_v55 = vlaneseq }
  0x26   :  { %1039 = vset.pattern.permute.xlu0 %v1092_v0  ;;  %758 = vmatprep.subr.mxu0 %v1093_v1  ;;  %v94_v3 = vld [vmem:[%s1448_s2 + $0x80] sm:$0xff]  ;;  %v79_v7 = vld [vmem:[%s1448_s2 + $0x8] sm:$0xff]  ;;  %v96_v8 = vld [vmem:[%s1448_s2 + $0x90] sm:$0xff]  ;;  %vm1094_vm0 = vmmov 0   ;;  %v1095_v36 = vmov 0.0|0.0   ;;  %vm127_vm1 = vcmask 64512  }
  0x27   :  { %70 = vperm.xlu0 %1039, %v66_v2   ;;  %v903_v5 = vpack.c.bf16 %v95_v4, %v94_v3  ;;  %v78_v6 = vld [vmem:[%s1448_s2] sm:$0xff]  ;;  %v97_v10 = vld [vmem:[%s1448_s2 + $0x98] sm:$0xff]  ;;  %v80_v11 = vld [vmem:[%s1448_s2 + $0x10] sm:$0xff]  ;;  %760 = vmatprep.mubr.msk.f32.mxu0 %vm1094_vm0, %v1093_v1  ;;  %v68_v56 = vand.u32 127, %v67_v55 }
  0x28   :  { %v905_v9 = vpack.c.bf16 %v79_v7, %v78_v6  ;;  %v81_v12 = vld [vmem:[%s1448_s2 + $0x18] sm:$0xff]  ;;  %v907_v13 = vpack.c.bf16 %v97_v10, %v96_v8  ;;  %v98_v14 = vld [vmem:[%s1448_s2 + $0xa0] sm:$0xff]  ;;  %v99_v15 = vld [vmem:[%s1448_s2 + $0xa8] sm:$0xff] }
  0x29   :  { %904 = vmatprep.subr.bf16.mxu1 %v903_v5  ;;  %v909_v16 = vpack.c.bf16 %v81_v12, %v80_v11  ;;  %v911_v17 = vpack.c.bf16 %v99_v15, %v98_v14  ;;  %v82_v18 = vld [vmem:[%s1448_s2 + $0x20] sm:$0xff]  ;;  %v83_v19 = vld [vmem:[%s1448_s2 + $0x28] sm:$0xff]  ;;  %v100_v20 = vld [vmem:[%s1448_s2 + $0xb0] sm:$0xff] }
  0x2a   :  { %906 = vmatpush3.bf16.msra.mxu1 %v905_v9  ;;  %v101_v21 = vld [vmem:[%s1448_s2 + $0xb8] sm:$0xff]  ;;  %v913_v22 = vpack.c.bf16 %v83_v19, %v82_v18  ;;  %v84_v24 = vld [vmem:[%s1448_s2 + $0x30] sm:$0xff]  ;;  %v102_v26 = vld [vmem:[%s1448_s2 + $0xc0] sm:$0xff] }
  0x2b   :  { %908 = vmatprep.subr.bf16.mxu1 %v907_v13  ;;  %v915_v23 = vpack.c.bf16 %v101_v21, %v100_v20  ;;  %v85_v25 = vld [vmem:[%s1448_s2 + $0x38] sm:$0xff]  ;;  %v103_v27 = vld [vmem:[%s1448_s2 + $0xc8] sm:$0xff]  ;;  %v126_v29 = vld [vmem:[%s1449_s3] sm:$0xff] }
  0x2c   :  { %v76_v28 = vld [vmem:[%s1447_s1 + $0x8] sm:$0xff]  ;;  %v917_v30 = vpack.c.bf16 %v85_v25, %v84_v24  ;;  %v919_v31 = vpack.c.bf16 %v103_v27, %v102_v26  ;;  %v86_v32 = vld [vmem:[%s1448_s2 + $0x40] sm:$0xff]  ;;  %759 = vmatpush3.msra.mxu0 %v126_v29  ;;  %v104_v34 = vld [vmem:[%s1448_s2 + $0xd0] sm:$0xff] }
  0x2d   :  { %265 = vmatprep.mubr.f32.mxu1 %v76_v28  ;;  %v87_v33 = vld [vmem:[%s1448_s2 + $0x48] sm:$0xff]  ;;  %v105_v35 = vld [vmem:[%s1448_s2 + $0xd8] sm:$0xff]  ;;  %935 = vmatprep.subr.bf16.mxu0 %v1095_v36  ;;  %v88_v39 = vld [vmem:[%s1448_s2 + $0x50] sm:$0xff] }
  0x2e   :  { %910 = vmatpush3.bf16.msra.mxu1 %v909_v16  ;;  %v921_v37 = vpack.c.bf16 %v87_v33, %v86_v32  ;;  %v923_v38 = vpack.c.bf16 %v105_v35, %v104_v34  ;;  %v89_v40 = vld [vmem:[%s1448_s2 + $0x58] sm:$0xff]  ;;  %v106_v41 = vld [vmem:[%s1448_s2 + $0xe0] sm:$0xff]  ;;  %v107_v42 = vld [vmem:[%s1448_s2 + $0xe8] sm:$0xff] }
  0x2f   :  { %912 = vmatprep.subr.bf16.mxu1 %v911_v17  ;;  %v925_v43 = vpack.c.bf16 %v89_v40, %v88_v39  ;;  %v927_v44 = vpack.c.bf16 %v107_v42, %v106_v41  ;;  %v90_v45 = vld [vmem:[%s1448_s2 + $0x60] sm:$0xff]  ;;  %v91_v46 = vld [vmem:[%s1448_s2 + $0x68] sm:$0xff]  ;;  %v108_v47 = vld [vmem:[%s1448_s2 + $0xf0] sm:$0xff] }
  0x30   :  { %v109_v48 = vld [vmem:[%s1448_s2 + $0xf8] sm:$0xff]  ;;  %v929_v49 = vpack.c.bf16 %v91_v46, %v90_v45  ;;  %v92_v51 = vld [vmem:[%s1448_s2 + $0x70] sm:$0xff]  ;;  %v75_v54 = vld [vmem:[%s1447_s1] sm:$0xff] }
  0x31   :  { %v931_v50 = vpack.c.bf16 %v109_v48, %v108_v47  ;;  %v93_v52 = vld [vmem:[%s1448_s2 + $0x78] sm:$0xff]  ;;  %v110_v57 = vld [vmem:[%s1448_s2 + $0x100] sm:$0xff]  ;;  %v111_v58 = vld [vmem:[%s1448_s2 + $0x108] sm:$0xff] }
  0x32   :  { %914 = vmatpush3.bf16.msra.mxu1 %v913_v22  ;;  %v933_v53 = vpack.c.bf16 %v93_v52, %v92_v51  ;;  %v936_v60 = vpack.c.bf16 %v111_v58, %v110_v57  ;;  %v112_v61 = vld [vmem:[%s1448_s2 + $0x110] sm:$0xff]  ;;  %v113_v62 = vld [vmem:[%s1448_s2 + $0x118] sm:$0xff]  ;;  %v114_v2 = vld [vmem:[%s1448_s2 + $0x120] sm:$0xff] }
  0x33   :  { %916 = vmatprep.subr.bf16.mxu1 %v915_v23  ;;  %v939_v0 = vpack.c.bf16 %v113_v62, %v112_v61  ;;  %v115_v3 = vld [vmem:[%s1448_s2 + $0x128] sm:$0xff]  ;;  %v116_v5 = vld [vmem:[%s1448_s2 + $0x130] sm:$0xff]  ;;  %v117_v6 = vld [vmem:[%s1448_s2 + $0x138] sm:$0xff] }
  0x34   :  { %v942_v4 = vpack.c.bf16 %v115_v3, %v114_v2  ;;  %v945_v7 = vpack.c.bf16 %v117_v6, %v116_v5  ;;  %v118_v8 = vld [vmem:[%s1448_s2 + $0x140] sm:$0xff]  ;;  %v119_v9 = vld [vmem:[%s1448_s2 + $0x148] sm:$0xff]  ;;  %v120_v11 = vld [vmem:[%s1448_s2 + $0x150] sm:$0xff] }
  0x35   :  { %v948_v10 = vpack.c.bf16 %v119_v9, %v118_v8  ;;  %v121_v12 = vld [vmem:[%s1448_s2 + $0x158] sm:$0xff]  ;;  %v122_v14 = vld [vmem:[%s1448_s2 + $0x160] sm:$0xff]  ;;  %v123_v15 = vld [vmem:[%s1448_s2 + $0x168] sm:$0xff] }
  0x36   :  { %918 = vmatpush3.bf16.msra.mxu1 %v917_v30  ;;  %v951_v13 = vpack.c.bf16 %v121_v12, %v120_v11  ;;  %v954_v16 = vpack.c.bf16 %v123_v15, %v122_v14  ;;  %v124_v17 = vld [vmem:[%s1448_s2 + $0x170] sm:$0xff]  ;;  %v125_v18 = vld [vmem:[%s1448_s2 + $0x178] sm:$0xff]  ;;  %v352_v21 = vld [vmem:[%s1451_s5] sm:$0xff] }
  0x37   :  { %920 = vmatprep.subr.bf16.mxu1 %v919_v31  ;;  %v957_v19 = vpack.c.bf16 %v125_v18, %v124_v17  ;;  %v77_v20 = vld [vmem:[%s1447_s1 + $0x10] sm:$0xff]  ;;  %v353_v22 = vld [vmem:[%s1451_s5 + $0x8] sm:$0xff]  ;;  %v355_v25 = vld [vmem:[%s1451_s5 + $0x18] sm:$0xff] }
  0x38   :  { %v354_v23 = vld [vmem:[%s1451_s5 + $0x10] sm:$0xff]  ;;  %v960_v24 = vpack.c.bf16 %v353_v22, %v352_v21  ;;  %v356_v27 = vld [vmem:[%s1451_s5 + $0x20] sm:$0xff]  ;;  %v357_v28 = vld [vmem:[%s1451_s5 + $0x28] sm:$0xff] }
  0x39   :  { %v963_v26 = vpack.c.bf16 %v355_v25, %v354_v23  ;;  %v966_v29 = vpack.c.bf16 %v357_v28, %v356_v27  ;;  %v358_v30 = vld [vmem:[%s1451_s5 + $0x30] sm:$0xff]  ;;  %v359_v31 = vld [vmem:[%s1451_s5 + $0x38] sm:$0xff]  ;;  %v360_v33 = vld [vmem:[%s1451_s5 + $0x40] sm:$0xff] }
  0x3a   :  { %922 = vmatpush3.bf16.msra.mxu1 %v921_v37  ;;  %v969_v32 = vpack.c.bf16 %v359_v31, %v358_v30  ;;  %v361_v34 = vld [vmem:[%s1451_s5 + $0x48] sm:$0xff]  ;;  %v362_v37 = vld [vmem:[%s1451_s5 + $0x50] sm:$0xff]  ;;  %v364_v40 = vld [vmem:[%s1451_s5 + $0x60] sm:$0xff] }
  0x3b   :  { %924 = vmatprep.subr.bf16.mxu1 %v923_v38  ;;  %v972_v35 = vpack.c.bf16 %v361_v34, %v360_v33  ;;  %v363_v38 = vld [vmem:[%s1451_s5 + $0x58] sm:$0xff]  ;;  %v365_v41 = vld [vmem:[%s1451_s5 + $0x68] sm:$0xff]  ;;  %v366_v46 = vld [vmem:[%s1451_s5 + $0x70] sm:$0xff] }
  0x3c   :  { %v975_v39 = vpack.c.bf16 %v363_v38, %v362_v37  ;;  %v978_v42 = vpack.c.bf16 %v365_v41, %v364_v40  ;;  %v367_v47 = vld [vmem:[%s1451_s5 + $0x78] sm:$0xff]  ;;  %v450_v51 = vld [vmem:[#allocation2 + $0x10] sm:$0xff]  ;;  %v452_v55 = vld [vmem:[#allocation2 + $0x20] sm:$0xff] }
  0x3d   :  { %v981_v48 = vpack.c.bf16 %v367_v47, %v366_v46  ;;  %v454_v58 = vld [vmem:[#allocation2 + $0x30] sm:$0xff]  ;;  %v456_v61 = vld [vmem:[#allocation2 + $0x40] sm:$0xff]  ;;  %v457_v62 = vld [vmem:[#allocation2 + $0x48] sm:$0xff] }
  0x3e   :  { %926 = vmatpush3.bf16.msra.mxu1 %v925_v43  ;;  %v459_v2 = vld [vmem:[#allocation2 + $0x58] sm:$0xff]  ;;  %v461_v5 = vld [vmem:[#allocation2 + $0x68] sm:$0xff]  ;;  %v649_v11 = vld [vmem:[%s1450_s4] ss:$0 sm:$0xff] }
  0x3f   :  { %928 = vmatprep.subr.bf16.mxu1 %v927_v44  ;;  %v462_v17 = vld [vmem:[#allocation2 + $0x70] sm:$0xff]  ;;  %v463_v18 = vld [vmem:[#allocation2 + $0x78] sm:$0xff]  ;;  %v545_v21 = vld [vmem:[#allocation4 + $0x8] sm:$0xff] }
  0x40   :  { %v546_v22 = vld [vmem:[#allocation4 + $0x10] sm:$0xff]  ;;  %v549_v27 = vld [vmem:[#allocation4 + $0x28] sm:$0xff]  ;;  %v552_v31 = vld [vmem:[#allocation4 + $0x40] sm:$0xff] }
  0x41   :  { %v554_v34 = vld [vmem:[#allocation4 + $0x50] sm:$0xff]  ;;  %v556_v38 = vld [vmem:[#allocation4 + $0x60] sm:$0xff] }
  0x42   :  { %930 = vmatpush3.bf16.msra.mxu1 %v929_v49  ;;  %v448_v49 = vld [vmem:[#allocation2] sm:$0xff]  ;;  %v558_v47 = vld [vmem:[#allocation4 + $0x70] sm:$0xff] }
  0x43   :  { %932 = vmatprep.subr.bf16.mxu1 %v931_v50  ;;  %v449_v50 = vld [vmem:[#allocation2 + $0x8] sm:$0xff]  ;;  %v650_v41 = vld [vmem:[%s1452_s6] ss:$0 sm:$0xff] }
  0x44   :  { %v984_v52 = vpack.c.bf16 %v449_v50, %v448_v49  ;;  %v651_v50 = vld [vmem:[%s1454_s8] ss:$0 sm:$0xff] }
  0x46   :  { %934 = vmatpush3.bf16.msra.mxu1 %v933_v53  ;;  %v451_v53 = vld [vmem:[#allocation2 + $0x18] sm:$0xff] }
  0x47   :  { %959 = vmatprep.subr.bf16.mxu1 %v1095_v36 }
  0x49   :  { %266 = vmatmul.mubr.f32.vlgmr.msra.gmra.mrb[0].mxu1 %v75_v54  ;;  %v987_v54 = vpack.c.bf16 %v451_v53, %v450_v51 }
  0x4a   :  { %830 = vmatprep.mubr.msk.f32.mxu1 %vm1094_vm0, %v1093_v1  ;;  %961 = vmatpush3.bf16.msra.mxu1 %v960_v24  ;;  %v547_v24 = vld [vmem:[#allocation4 + $0x18] sm:$0xff] }
  0x4b   :  { %962 = vmatprep.subr.bf16.mxu1 %v1095_v36  ;;  %v1011_v25 = vpack.c.bf16 %v547_v24, %v546_v22 }
  0x4e   :  { %964 = vmatpush3.bf16.msra.mxu1 %v963_v26  ;;  %v548_v26 = vld [vmem:[#allocation4 + $0x20] sm:$0xff] }
  0x4f   :  { %965 = vmatprep.subr.bf16.mxu1 %v1095_v36  ;;  %v1014_v28 = vpack.c.bf16 %v549_v27, %v548_v26 }
  0x52   :  { %967 = vmatpush3.bf16.msra.mxu1 %v966_v29  ;;  %v551_v29 = vld [vmem:[#allocation4 + $0x38] sm:$0xff] }
  0x53   :  { %968 = vmatprep.subr.bf16.mxu1 %v1095_v36 }
  0x56   :  { %970 = vmatpush3.bf16.msra.mxu1 %v969_v32  ;;  %v553_v32 = vld [vmem:[#allocation4 + $0x48] sm:$0xff] }
  0x57   :  { %971 = vmatprep.subr.bf16.mxu1 %v1095_v36  ;;  %v1020_v33 = vpack.c.bf16 %v553_v32, %v552_v31 }
  0x5a   :  { %973 = vmatpush3.bf16.msra.mxu1 %v972_v35  ;;  %v555_v35 = vld [vmem:[#allocation4 + $0x58] sm:$0xff] }
  0x5b   :  { %974 = vmatprep.subr.bf16.mxu1 %v1095_v36  ;;  %v1023_v37 = vpack.c.bf16 %v555_v35, %v554_v34 }
  0x5e   :  { %976 = vmatpush3.bf16.msra.mxu1 %v975_v39  ;;  %v557_v39 = vld [vmem:[#allocation4 + $0x68] sm:$0xff] }
  0x5f   :  { %977 = vmatprep.subr.bf16.mxu1 %v1095_v36  ;;  %v1026_v40 = vpack.c.bf16 %v557_v39, %v556_v38 }
  0x62   :  { %979 = vmatpush3.bf16.msra.mxu1 %v978_v42 }
  0x63   :  { %980 = vmatprep.subr.bf16.mxu1 %v1095_v36 }
  0x66   :  { %982 = vmatpush3.bf16.msra.mxu1 %v981_v48  ;;  %v559_v48 = vld [vmem:[#allocation4 + $0x78] sm:$0xff] }
  0x67   :  { %1007 = vmatprep.subr.bf16.mxu1 %v1095_v36  ;;  %v1029_v49 = vpack.c.bf16 %v559_v48, %v558_v47 }
  0xa6   :  { %v71_v59 = vpop.permute.xlu0 %70 }
  0xa7   :  { %vm72_vm2 = vcmp.eq.s32.totalorder %v68_v56, %v71_v59  ;;  %v453_v56 = vld [vmem:[#allocation2 + $0x28] sm:$0xff]  ;;  %v455_v59 = vld [vmem:[#allocation2 + $0x38] sm:$0xff] }
  0xa8   :  { %v647_v63 = vsel %vm72_vm2, 1.0, %v1093_v1  ;;  %v990_v57 = vpack.c.bf16 %v453_v56, %v452_v55  ;;  %v652_v55 = vld [vmem:[%s1456_s10] ss:$0 sm:$0xff] }
  0xa9   :  { %761 = vmatmul.mubr.msk.f32.vlgmr.msra.gmra.mrb[0].mxu0 %vm127_vm1, %v647_v63  ;;  %v996_v63 = vpack.c.bf16 %v457_v62, %v456_v61 }
  0xaa   :  { %937 = vmatpush3.bf16.msra.mxu0 %v936_v60  ;;  %795 = vmatprep.mubr.msk.f32.mxu0 %vm1094_vm0, %v1093_v1  ;;  %v993_v60 = vpack.c.bf16 %v455_v59, %v454_v58 }
  0xab   :  { %938 = vmatprep.subr.bf16.mxu0 %v1095_v36 }
  0xae   :  { %940 = vmatpush3.bf16.msra.mxu0 %v939_v0  ;;  %v458_v0 = vld [vmem:[#allocation2 + $0x50] sm:$0xff] }
  0xaf   :  { %941 = vmatprep.subr.bf16.mxu0 %v1095_v36  ;;  %v999_v3 = vpack.c.bf16 %v459_v2, %v458_v0 }
  0xb2   :  { %943 = vmatpush3.bf16.msra.mxu0 %v942_v4  ;;  %v460_v4 = vld [vmem:[#allocation2 + $0x60] sm:$0xff] }
  0xb3   :  { %944 = vmatprep.subr.bf16.mxu0 %v1095_v36  ;;  %v1002_v6 = vpack.c.bf16 %v461_v5, %v460_v4 }
  0xb6   :  { %946 = vmatpush3.bf16.msra.mxu0 %v945_v7 }
  0xb7   :  { %947 = vmatprep.subr.bf16.mxu0 %v1095_v36 }
  0xba   :  { %949 = vmatpush3.bf16.msra.mxu0 %v948_v10 }
  0xbb   :  { %950 = vmatprep.subr.bf16.mxu0 %v1095_v36 }
  0xbe   :  { %952 = vmatpush3.bf16.msra.mxu0 %v951_v13 }
  0xbf   :  { %953 = vmatprep.subr.bf16.mxu0 %v1095_v36 }
  0xc2   :  { %955 = vmatpush3.bf16.msra.mxu0 %v954_v16 }
  0xc3   :  { %956 = vmatprep.subr.bf16.mxu0 %v1095_v36 }
  0xc6   :  { %958 = vmatpush3.bf16.msra.mxu0 %v957_v19  ;;  %v1005_v19 = vpack.c.bf16 %v463_v18, %v462_v17 }
  0xc7   :  { %983 = vmatprep.subr.bf16.mxu0 %v1095_v36 }
  0xc9   :  { %796 = vmatmul.mubr.f32.vlgmr.msra.gmra.mrb[2].mxu0 %v77_v20  ;;  %v544_v20 = vld [vmem:[#allocation4] sm:$0xff] }
  0xca   :  { %865 = vmatprep.mubr.msk.f32.mxu0 %vm1094_vm0, %v1093_v1  ;;  %985 = vmatpush3.bf16.msra.mxu0 %v984_v52  ;;  %v1008_v23 = vpack.c.bf16 %v545_v21, %v544_v20 }
  0xcb   :  { %986 = vmatprep.subr.bf16.mxu0 %v1095_v36 }
  0xce   :  { %988 = vmatpush3.bf16.msra.mxu0 %v987_v54 }
  0xcf   :  { %989 = vmatprep.subr.bf16.mxu0 %v1095_v36 }
  0xd2   :  { %991 = vmatpush3.bf16.msra.mxu0 %v990_v57 }
  0xd3   :  { %992 = vmatprep.subr.bf16.mxu0 %v1095_v36 }
  0xd6   :  { %994 = vmatpush3.bf16.msra.mxu0 %v993_v60 }
  0xd7   :  { %995 = vmatprep.subr.bf16.mxu0 %v1095_v36 }
  0xda   :  { %997 = vmatpush3.bf16.msra.mxu0 %v996_v63 }
  0xdb   :  { %998 = vmatprep.subr.bf16.mxu0 %v1095_v36 }
  0xde   :  { %1000 = vmatpush3.bf16.msra.mxu0 %v999_v3 }
  0xdf   :  { %1001 = vmatprep.subr.bf16.mxu0 %v1095_v36 }
  0xe2   :  { %1003 = vmatpush3.bf16.msra.mxu0 %v1002_v6 }
  0xe3   :  { %1004 = vmatprep.subr.bf16.mxu0 %v1095_v36 }
  0xe6   :  { %1006 = vmatpush3.bf16.msra.mxu0 %v1005_v19 }
 0x11c   :  { %v687_v43 = vpop.f32.mrb[0].mxu1 }
 0x11d   :  { %v688_v44 = vpop.f32.mrb[1].mxu1 }
 0x11e   :  { %v689_v45 = vadd.f32 %v688_v44, %v687_v43 }
 0x17c   :  { %v197_v7 = vpop.f32.mrb[0].mxu0 }
 0x17d   :  { %v268_v8 = vadd.f32 %v689_v45, %v197_v7  ;;  %v762_v9 = vpop.f32.mrb[1].mxu0 }
 0x19c   :  { %v337_v10 = vpop.f32.mrb[2].mxu0 }
 0x19d   :  { %v338_v12 = vadd.f32 %v337_v10, %v268_v8  ;;  %v797_v13 = vpop.f32.mrb[3].mxu0 }
 0x19f   :  { %v348_v14 = vadd.f32 %v649_v11, %v338_v12 }
 0x1a1   :  { %v350_v15 = vmul.f32 0.01, %v348_v14  ;;  %vm349_vm3 = vcmp.gt.f32.partialorder %v348_v14, 0.0 }
 0x1a3   :  { %v351_v16 = vsel %vm349_vm3, %v348_v14, %v350_v15 }
 0x1a4   :  { %831 = vmatmul.mubr.f32.vlgmr.msra.gmra.mrb[2].mxu1 %v351_v16 }
 0x1a5   :  { %900 = vmatprep.mubr.msk.f32.mxu1 %vm1094_vm0, %v1093_v1  ;;  %1009 = vmatpush3.bf16.msra.mxu1 %v1008_v23  ;;  %v550_v1 = vld [vmem:[#allocation4 + $0x30] sm:$0xff] }
 0x1a6   :  { %1010 = vmatprep.subr.bf16.mxu1 %v1095_v36  ;;  %v1017_v30 = vpack.c.bf16 %v551_v29, %v550_v1 }
 0x1a9   :  { %1012 = vmatpush3.bf16.msra.mxu1 %v1011_v25 }
 0x1aa   :  { %1013 = vmatprep.subr.bf16.mxu1 %v1095_v36 }
 0x1ad   :  { %1015 = vmatpush3.bf16.msra.mxu1 %v1014_v28 }
 0x1ae   :  { %1016 = vmatprep.subr.bf16.mxu1 %v1095_v36 }
 0x1b1   :  { %1018 = vmatpush3.bf16.msra.mxu1 %v1017_v30 }
 0x1b2   :  { %1019 = vmatprep.subr.bf16.mxu1 %v1095_v36 }
 0x1b5   :  { %1021 = vmatpush3.bf16.msra.mxu1 %v1020_v33 }
 0x1b6   :  { %1022 = vmatprep.subr.bf16.mxu1 %v1095_v36 }
 0x1b9   :  { %1024 = vmatpush3.bf16.msra.mxu1 %v1023_v37 }
 0x1ba   :  { %1025 = vmatprep.subr.bf16.mxu1 %v1095_v36 }
 0x1bd   :  { %1027 = vmatpush3.bf16.msra.mxu1 %v1026_v40 }
 0x1be   :  { %1028 = vmatprep.subr.bf16.mxu1 %v1095_v36 }
 0x1c1   :  { %1030 = vmatpush3.bf16.msra.mxu1 %v1029_v49 }
 0x277   :  { %v441_v42 = vpop.f32.mrb[2].mxu1 }
 0x278   :  { %v442_v43 = vadd.f32 %v650_v41, %v441_v42  ;;  %v832_v44 = vpop.f32.mrb[3].mxu1 }
 0x27a   :  { %vm445_vm4 = vcmp.gt.f32.partialorder %v442_v43, 0.0  ;;  %v446_v45 = vmul.f32 0.01, %v442_v43 }
 0x27c   :  { %v447_v46 = vsel %vm445_vm4, %v442_v43, %v446_v45 }
 0x27d   :  { %866 = vmatmul.mubr.f32.vlgmr.msra.gmra.mrb[4].mxu0 %v447_v46 }
 0x350   :  { %v537_v36 = vpop.f32.mrb[4].mxu0 }
 0x351   :  { %v538_v51 = vadd.f32 %v651_v50, %v537_v36  ;;  %v867_v52 = vpop.f32.mrb[5].mxu0 }
 0x353   :  { %vm541_vm5 = vcmp.gt.f32.partialorder %v538_v51, 0.0  ;;  %v542_v53 = vmul.f32 0.01, %v538_v51 }
 0x355   :  { %v543_v54 = vsel %vm541_vm5, %v538_v51, %v542_v53 }
 0x356   :  { %901 = vmatmul.mubr.f32.vlgmr.msra.gmra.mrb[4].mxu1 %v543_v54 }
 0x429   :  { %v633_v56 = vpop.f32.mrb[4].mxu1 }
 0x42a   :  { %v634_v57 = vadd.f32 %v652_v55, %v633_v56  ;;  %v902_v58 = vpop.f32.mrb[5].mxu1 }
 0x42c   :  { %vm637_vm6 = vcmp.gt.f32.partialorder %v634_v57, 0.0  ;;  %v638_v59 = vmul.f32 0.01, %v634_v57 }
 0x42e   :  { %v639_v60 = vsel %vm637_vm6, %v634_v57, %v638_v59 }
 0x42f   :  { %640 = vst [vmem:[%s1457_s11] sm:$0xff] %v639_v60 }
 0x430   :  { %645 = vsyncpa [#allocation3], 1 }
 0x431   :  { %646 = vsyncpa [#allocation5], 1 }

</bundles_post_ra>
